<compile_context>
chip_gen: v6e
topology: v6e:2x2x1
jax: 0.10.0
libtpu: 0.0.40
codegen_flags: <defaults>
</compile_context>

<pallas_src>
import functools

import jax
import jax.numpy as jnp
from jax.experimental import pallas as pl
from jax.experimental.pallas import tpu as pltpu


def _folded_conv_kernel(x_ref, w_ref, rc_ref, b_ref, o_ref, *,
                        H, W, k, pad, compute_dtype):
    """Fused (depthwise*pointwise folded) conv for one batch item.

    x_ref:  (1, C, H*W)     flattened NCHW input (channels on sublanes)
    w_ref:  (k*k, Cout, C)  folded weights, tap index = kh*k + kw
    rc_ref: (2, H*W)        int32 row / col index of every flattened pixel
    b_ref:  (Cout, 1)       folded bias (f32)
    o_ref:  (1, Cout, H*W)  flattened NCHW output (lane-dense stores)
    """
    HW = H * W
    Cout = w_ref.shape[1]

    x = x_ref[0]                       # (C, HW)  f32
    rc = rc_ref[...]                   # (2, HW)  int32
    rows = rc[0:1]                     # (1, HW)
    cols = rc[1:2]                     # (1, HW)

    acc = jnp.zeros((Cout, HW), jnp.float32)
    for kh in range(k):
        for kw in range(k):
            tap = kh * k + kw
            dr = kh - pad
            dc = kw - pad
            # Source pixel for output (r, c) is (r+dr, c+dc); in flattened lane
            # space that's a static circular shift by dr*W + dc.
            shift = (-(dr * W + dc)) % HW
            xs = x if shift == 0 else pltpu.roll(x, shift, 1)   # XLU lane rotate

            # Zero-padding: select 0 where the source pixel falls outside the
            # image (also kills wrap-around leakage from the circular roll).
            conds = []
            if dr > 0:
                conds.append(rows < H - dr)
            elif dr < 0:
                conds.append(rows >= -dr)
            if dc > 0:
                conds.append(cols < W - dc)
            elif dc < 0:
                conds.append(cols >= -dc)
            if conds:                                           # centre tap: skip
                valid = conds[0]
                for c_ in conds[1:]:
                    valid = valid & c_
                xs = jnp.where(valid, xs, jnp.zeros_like(xs))

            # Real work on the MXU (bf16 operands, f32 accumulation).
            acc = acc + jnp.dot(w_ref[tap], xs.astype(compute_dtype),
                                preferred_element_type=jnp.float32)

    o_ref[0] = (acc + b_ref[...]).astype(o_ref.dtype)


def depthwise_separable_conv2d(x, dw_weight, dw_bias, pw_weight, pw_bias, *,
                               kernel_size=3, padding=1, stride=1,
                               expansion_factor=6,
                               compute_dtype=jnp.bfloat16):
    """x: (N, C, H, W) NCHW.  Weights follow the PyTorch module's shapes:
       dw_weight (C*E, 1, k, k), dw_bias (C*E,),
       pw_weight (Cout, C*E, 1, 1), pw_bias (Cout,).
    Returns the NCHW output of DepthWiseSeparableConv2D (stride=1, 'same')."""
    N, C, H, W = x.shape
    k = kernel_size
    E = expansion_factor
    CE = C * E
    Cout = pw_weight.shape[0]
    assert dw_weight.shape == (CE, 1, k, k), dw_weight.shape
    assert pw_weight.shape == (Cout, CE, 1, 1), pw_weight.shape
    assert stride == 1            # TODO(synk): strided depthwise not implemented
    assert 2 * padding == k - 1   # TODO(synk): only 'same' output size supported
    HW = H * W
    f32 = jnp.float32
    cdt = f32 if compute_dtype is None else compute_dtype

    # --- glue: free reshapes + tiny parameter folding (no HBM passes over x) ---
    x_flat = x.reshape(N, C, HW)

    # Fold depthwise + pointwise weights (exact, done once in f32):
    #   w_fold[tap, o, c] = sum_e pw[o, c*E+e] * dw[c*E+e, tap]
    dw_w = dw_weight[:, 0].reshape(C, E, k * k).astype(f32)        # (C, E, kk)
    pw_w = pw_weight[:, :, 0, 0].astype(f32)                       # (Cout, CE)
    pw_r = pw_w.reshape(Cout, C, E)                                # (Cout, C, E)
    w_fold = jnp.einsum('oce,cet->toc', pw_r, dw_w).astype(cdt)    # (kk, Cout, C)
    b_fold = (pw_w @ dw_bias.astype(f32)
              + pw_bias.astype(f32)).reshape(Cout, 1)              # (Cout, 1) f32

    # Tiny row/col coordinate map for the in-kernel padding masks (2*HW*4 bytes,
    # constant block index -> fetched once; replaces the old k*k*HW f32 masks).
    p = jnp.arange(HW, dtype=jnp.int32)
    rc = jnp.stack([p // W, p % W], axis=0)                        # (2, HW) i32

    itemsize = jnp.dtype(x.dtype).itemsize
    flops = N * HW * (2 * k * k * Cout * C + 2 * Cout)
    bytes_accessed = (N * C * HW * itemsize + N * Cout * HW * itemsize
                      + k * k * Cout * C * jnp.dtype(cdt).itemsize
                      + Cout * 4 + 2 * HW * 4)

    kern = functools.partial(_folded_conv_kernel, H=H, W=W, k=k, pad=padding,
                             compute_dtype=cdt)
    out_flat = pl.pallas_call(
        kern,
        out_shape=jax.ShapeDtypeStruct((N, Cout, HW), x.dtype),
        grid_spec=pltpu.PrefetchScalarGridSpec(
            num_scalar_prefetch=0,
            grid=(N,),
            in_specs=[
                pl.BlockSpec((1, C, HW), lambda n: (n, 0, 0)),
                pl.BlockSpec((k * k, Cout, C), lambda n: (0, 0, 0)),
                pl.BlockSpec((2, HW), lambda n: (0, 0)),
                pl.BlockSpec((Cout, 1), lambda n: (0, 0)),
            ],
            out_specs=pl.BlockSpec((1, Cout, HW), lambda n: (n, 0, 0)),
        ),
        compiler_params=pltpu.CompilerParams(
            dimension_semantics=("parallel",),
            vmem_limit_bytes=32 * 1024 * 1024),
        cost_estimate=pl.CostEstimate(flops=int(flops), transcendentals=0,
                                      bytes_accessed=int(bytes_accessed)),
    )(x_flat, w_fold, rc, b_fold)

    return out_flat.reshape(N, Cout, H, W)                         # free reshape


if __name__ == "__main__":
    # Module config (defaults of DepthWiseSeparableConv2D)
    in_channels = 4
    out_channels = 8
    kernel_size = 3
    padding = 1
    expansion_factor = 6
    stride = 1

    N, H, W = 2, 16, 16
    C = in_channels
    CE = C * expansion_factor

    key = jax.random.PRNGKey(0)
    kx, k1, k2, k3, k4 = jax.random.split(key, 5)

    x = jax.random.normal(kx, (N, C, H, W), jnp.float32)
    dw_weight = 0.1 * jax.random.normal(k1, (CE, 1, kernel_size, kernel_size),
                                        jnp.float32)
    dw_bias = 0.1 * jax.random.normal(k2, (CE,), jnp.float32)
    pw_weight = 0.1 * jax.random.normal(k3, (out_channels, CE, 1, 1), jnp.float32)
    pw_bias = 0.1 * jax.random.normal(k4, (out_channels,), jnp.float32)

    fn = jax.jit(functools.partial(
        depthwise_separable_conv2d,
        kernel_size=kernel_size, padding=padding, stride=stride,
        expansion_factor=expansion_factor, compute_dtype=jnp.bfloat16))

    out = fn(x, dw_weight, dw_bias, pw_weight, pw_bias)
    jax.block_until_ready(out)
    assert out.shape == (N, out_channels, H, W), out.shape

    # Reference: XLA grouped conv + 1x1 conv (same math as the PyTorch module).
    ref_dw = jax.lax.conv_general_dilated(
        x, dw_weight, window_strides=(1, 1),
        padding=((padding, padding), (padding, padding)),
        dimension_numbers=("NCHW", "OIHW", "NCHW"),
        feature_group_count=in_channels) + dw_bias.reshape(1, CE, 1, 1)
    ref = jax.lax.conv_general_dilated(
        ref_dw, pw_weight, window_strides=(1, 1), padding="VALID",
        dimension_numbers=("NCHW", "OIHW", "NCHW")
    ) + pw_bias.reshape(1, out_channels, 1, 1)

    max_err = float(jnp.max(jnp.abs(out - ref)))
    assert max_err < 2e-2, f"max abs error too large: {max_err}"
    print("KERNEL_OK")
</pallas_src>

<mosaic_0001>
module attributes {stable_mosaic.version = 11 : i64} {
  func.func @_folded_conv_kernel(%arg0: i32, %arg1: memref<1x4x256xf32, #tpu.memory_space<vmem>>, %arg2: memref<9x8x4xbf16, #tpu.memory_space<vmem>>, %arg3: memref<2x256xi32, #tpu.memory_space<vmem>>, %arg4: memref<8x1xf32, #tpu.memory_space<vmem>>, %arg5: memref<1x8x256xf32, #tpu.memory_space<vmem>>) attributes {dimension_semantics = [#tpu.dimension_semantics<parallel>], iteration_bounds = array<i64: 2>, scalar_prefetch = 0 : i64, scratch_operands = 0 : i64, tpu.core_type = #tpu.core_type<tc>, window_params = [{transform_indices = @transform_0, window_bounds = array<i64: 1, 4, 256>}, {pipeline_mode = #tpu.pipeline_mode<synchronous>, transform_indices = @transform_1, window_bounds = array<i64: 9, 8, 4>}, {pipeline_mode = #tpu.pipeline_mode<synchronous>, transform_indices = @transform_2, window_bounds = array<i64: 2, 256>}, {pipeline_mode = #tpu.pipeline_mode<synchronous>, transform_indices = @transform_3, window_bounds = array<i64: 8, 1>}, {transform_indices = @transform_4, window_bounds = array<i64: 1, 8, 256>}]} {
    %c0 = arith.constant 0 : index
    %c0_0 = arith.constant 0 : index
    %c0_1 = arith.constant 0 : index
    %0 = vector.load %arg1[%c0, %c0_0, %c0_1] : memref<1x4x256xf32, #tpu.memory_space<vmem>>, vector<1x4x256xf32>
    %1 = vector.shape_cast %0 : vector<1x4x256xf32> to vector<4x256xf32>
    %c0_2 = arith.constant 0 : index
    %c0_3 = arith.constant 0 : index
    %2 = vector.load %arg3[%c0_2, %c0_3] : memref<2x256xi32, #tpu.memory_space<vmem>>, vector<2x256xi32>
    %3 = vector.extract_strided_slice %2 {offsets = [0, 0], sizes = [1, 256], strides = [1, 1]} : vector<2x256xi32> to vector<1x256xi32>
    %4 = vector.extract_strided_slice %2 {offsets = [1, 0], sizes = [1, 256], strides = [1, 1]} : vector<2x256xi32> to vector<1x256xi32>
    %cst = arith.constant 0.000000e+00 : f32
    %5 = vector.broadcast %cst : f32 to vector<8x256xf32>
    %c17_i32 = arith.constant 17 : i32
    %6 = tpu.dynamic_rotate %1 by %c17_i32 dim 1 : vector<4x256xf32>, i32 -> vector<4x256xf32>
    %c1_i32 = arith.constant 1 : i32
    %7 = vector.broadcast %c1_i32 : i32 to vector<1x256xi32>
    %8 = arith.cmpi sge, %3, %7 : vector<1x256xi32>
    %c1_i32_4 = arith.constant 1 : i32
    %9 = vector.broadcast %c1_i32_4 : i32 to vector<1x256xi32>
    %10 = arith.cmpi sge, %4, %9 : vector<1x256xi32>
    %11 = arith.andi %8, %10 : vector<1x256xi1>
    %cst_5 = arith.constant 0.000000e+00 : f32
    %12 = vector.broadcast %cst_5 : f32 to vector<4x256xf32>
    %13 = vector.shape_cast %11 : vector<1x256xi1> to vector<1x256xi1>
    %14 = vector.broadcast %13 : vector<1x256xi1> to vector<4x256xi1>
    %15 = arith.select %14, %6, %12 : vector<4x256xi1>, vector<4x256xf32>
    %c0_6 = arith.constant 0 : index
    %c0_7 = arith.constant 0 : index
    %c0_8 = arith.constant 0 : index
    %16 = vector.load %arg2[%c0_6, %c0_7, %c0_8] : memref<9x8x4xbf16, #tpu.memory_space<vmem>>, vector<1x8x4xbf16>
    %17 = vector.shape_cast %16 : vector<1x8x4xbf16> to vector<8x4xbf16>
    %18 = arith.truncf %15 : vector<4x256xf32> to vector<4x256xbf16>
    %cst_9 = arith.constant dense<0.000000e+00> : vector<8x256xf32>
    %19 = tpu.matmul %17, %18, %cst_9 {dimension_numbers = #tpu.dot_dimension_numbers<[1], [0], [0], [1], [0, 0, 1, 1], [], []>} : vector<8x4xbf16>, vector<4x256xbf16>, vector<8x256xf32> -> vector<8x256xf32>
    %20 = arith.addf %5, %19 : vector<8x256xf32>
    %c16_i32 = arith.constant 16 : i32
    %21 = tpu.dynamic_rotate %1 by %c16_i32 dim 1 : vector<4x256xf32>, i32 -> vector<4x256xf32>
    %c1_i32_10 = arith.constant 1 : i32
    %22 = vector.broadcast %c1_i32_10 : i32 to vector<1x256xi32>
    %23 = arith.cmpi sge, %3, %22 : vector<1x256xi32>
    %cst_11 = arith.constant 0.000000e+00 : f32
    %24 = vector.broadcast %cst_11 : f32 to vector<4x256xf32>
    %25 = vector.shape_cast %23 : vector<1x256xi1> to vector<1x256xi1>
    %26 = vector.broadcast %25 : vector<1x256xi1> to vector<4x256xi1>
    %27 = arith.select %26, %21, %24 : vector<4x256xi1>, vector<4x256xf32>
    %c1 = arith.constant 1 : index
    %c0_12 = arith.constant 0 : index
    %c0_13 = arith.constant 0 : index
    %28 = vector.load %arg2[%c1, %c0_12, %c0_13] : memref<9x8x4xbf16, #tpu.memory_space<vmem>>, vector<1x8x4xbf16>
    %29 = vector.shape_cast %28 : vector<1x8x4xbf16> to vector<8x4xbf16>
    %30 = arith.truncf %27 : vector<4x256xf32> to vector<4x256xbf16>
    %cst_14 = arith.constant dense<0.000000e+00> : vector<8x256xf32>
    %31 = tpu.matmul %29, %30, %cst_14 {dimension_numbers = #tpu.dot_dimension_numbers<[1], [0], [0], [1], [0, 0, 1, 1], [], []>} : vector<8x4xbf16>, vector<4x256xbf16>, vector<8x256xf32> -> vector<8x256xf32>
    %32 = arith.addf %20, %31 : vector<8x256xf32>
    %c15_i32 = arith.constant 15 : i32
    %33 = tpu.dynamic_rotate %1 by %c15_i32 dim 1 : vector<4x256xf32>, i32 -> vector<4x256xf32>
    %c1_i32_15 = arith.constant 1 : i32
    %34 = vector.broadcast %c1_i32_15 : i32 to vector<1x256xi32>
    %35 = arith.cmpi sge, %3, %34 : vector<1x256xi32>
    %c15_i32_16 = arith.constant 15 : i32
    %36 = vector.broadcast %c15_i32_16 : i32 to vector<1x256xi32>
    %37 = arith.cmpi slt, %4, %36 : vector<1x256xi32>
    %38 = arith.andi %35, %37 : vector<1x256xi1>
    %cst_17 = arith.constant 0.000000e+00 : f32
    %39 = vector.broadcast %cst_17 : f32 to vector<4x256xf32>
    %40 = vector.shape_cast %38 : vector<1x256xi1> to vector<1x256xi1>
    %41 = vector.broadcast %40 : vector<1x256xi1> to vector<4x256xi1>
    %42 = arith.select %41, %33, %39 : vector<4x256xi1>, vector<4x256xf32>
    %c2 = arith.constant 2 : index
    %c0_18 = arith.constant 0 : index
    %c0_19 = arith.constant 0 : index
    %43 = vector.load %arg2[%c2, %c0_18, %c0_19] : memref<9x8x4xbf16, #tpu.memory_space<vmem>>, vector<1x8x4xbf16>
    %44 = vector.shape_cast %43 : vector<1x8x4xbf16> to vector<8x4xbf16>
    %45 = arith.truncf %42 : vector<4x256xf32> to vector<4x256xbf16>
    %cst_20 = arith.constant dense<0.000000e+00> : vector<8x256xf32>
    %46 = tpu.matmul %44, %45, %cst_20 {dimension_numbers = #tpu.dot_dimension_numbers<[1], [0], [0], [1], [0, 0, 1, 1], [], []>} : vector<8x4xbf16>, vector<4x256xbf16>, vector<8x256xf32> -> vector<8x256xf32>
    %47 = arith.addf %32, %46 : vector<8x256xf32>
    %c1_i32_21 = arith.constant 1 : i32
    %48 = tpu.dynamic_rotate %1 by %c1_i32_21 dim 1 : vector<4x256xf32>, i32 -> vector<4x256xf32>
    %c1_i32_22 = arith.constant 1 : i32
    %49 = vector.broadcast %c1_i32_22 : i32 to vector<1x256xi32>
    %50 = arith.cmpi sge, %4, %49 : vector<1x256xi32>
    %cst_23 = arith.constant 0.000000e+00 : f32
    %51 = vector.broadcast %cst_23 : f32 to vector<4x256xf32>
    %52 = vector.shape_cast %50 : vector<1x256xi1> to vector<1x256xi1>
    %53 = vector.broadcast %52 : vector<1x256xi1> to vector<4x256xi1>
    %54 = arith.select %53, %48, %51 : vector<4x256xi1>, vector<4x256xf32>
    %c3 = arith.constant 3 : index
    %c0_24 = arith.constant 0 : index
    %c0_25 = arith.constant 0 : index
    %55 = vector.load %arg2[%c3, %c0_24, %c0_25] : memref<9x8x4xbf16, #tpu.memory_space<vmem>>, vector<1x8x4xbf16>
    %56 = vector.shape_cast %55 : vector<1x8x4xbf16> to vector<8x4xbf16>
    %57 = arith.truncf %54 : vector<4x256xf32> to vector<4x256xbf16>
    %cst_26 = arith.constant dense<0.000000e+00> : vector<8x256xf32>
    %58 = tpu.matmul %56, %57, %cst_26 {dimension_numbers = #tpu.dot_dimension_numbers<[1], [0], [0], [1], [0, 0, 1, 1], [], []>} : vector<8x4xbf16>, vector<4x256xbf16>, vector<8x256xf32> -> vector<8x256xf32>
    %59 = arith.addf %47, %58 : vector<8x256xf32>
    %c4 = arith.constant 4 : index
    %c0_27 = arith.constant 0 : index
    %c0_28 = arith.constant 0 : index
    %60 = vector.load %arg2[%c4, %c0_27, %c0_28] : memref<9x8x4xbf16, #tpu.memory_space<vmem>>, vector<1x8x4xbf16>
    %61 = vector.shape_cast %60 : vector<1x8x4xbf16> to vector<8x4xbf16>
    %62 = arith.truncf %1 : vector<4x256xf32> to vector<4x256xbf16>
    %cst_29 = arith.constant dense<0.000000e+00> : vector<8x256xf32>
    %63 = tpu.matmul %61, %62, %cst_29 {dimension_numbers = #tpu.dot_dimension_numbers<[1], [0], [0], [1], [0, 0, 1, 1], [], []>} : vector<8x4xbf16>, vector<4x256xbf16>, vector<8x256xf32> -> vector<8x256xf32>
    %64 = arith.addf %59, %63 : vector<8x256xf32>
    %c255_i32 = arith.constant 255 : i32
    %65 = tpu.dynamic_rotate %1 by %c255_i32 dim 1 : vector<4x256xf32>, i32 -> vector<4x256xf32>
    %c15_i32_30 = arith.constant 15 : i32
    %66 = vector.broadcast %c15_i32_30 : i32 to vector<1x256xi32>
    %67 = arith.cmpi slt, %4, %66 : vector<1x256xi32>
    %cst_31 = arith.constant 0.000000e+00 : f32
    %68 = vector.broadcast %cst_31 : f32 to vector<4x256xf32>
    %69 = vector.shape_cast %67 : vector<1x256xi1> to vector<1x256xi1>
    %70 = vector.broadcast %69 : vector<1x256xi1> to vector<4x256xi1>
    %71 = arith.select %70, %65, %68 : vector<4x256xi1>, vector<4x256xf32>
    %c5 = arith.constant 5 : index
    %c0_32 = arith.constant 0 : index
    %c0_33 = arith.constant 0 : index
    %72 = vector.load %arg2[%c5, %c0_32, %c0_33] : memref<9x8x4xbf16, #tpu.memory_space<vmem>>, vector<1x8x4xbf16>
    %73 = vector.shape_cast %72 : vector<1x8x4xbf16> to vector<8x4xbf16>
    %74 = arith.truncf %71 : vector<4x256xf32> to vector<4x256xbf16>
    %cst_34 = arith.constant dense<0.000000e+00> : vector<8x256xf32>
    %75 = tpu.matmul %73, %74, %cst_34 {dimension_numbers = #tpu.dot_dimension_numbers<[1], [0], [0], [1], [0, 0, 1, 1], [], []>} : vector<8x4xbf16>, vector<4x256xbf16>, vector<8x256xf32> -> vector<8x256xf32>
    %76 = arith.addf %64, %75 : vector<8x256xf32>
    %c241_i32 = arith.constant 241 : i32
    %77 = tpu.dynamic_rotate %1 by %c241_i32 dim 1 : vector<4x256xf32>, i32 -> vector<4x256xf32>
    %c15_i32_35 = arith.constant 15 : i32
    %78 = vector.broadcast %c15_i32_35 : i32 to vector<1x256xi32>
    %79 = arith.cmpi slt, %3, %78 : vector<1x256xi32>
    %c1_i32_36 = arith.constant 1 : i32
    %80 = vector.broadcast %c1_i32_36 : i32 to vector<1x256xi32>
    %81 = arith.cmpi sge, %4, %80 : vector<1x256xi32>
    %82 = arith.andi %79, %81 : vector<1x256xi1>
    %cst_37 = arith.constant 0.000000e+00 : f32
    %83 = vector.broadcast %cst_37 : f32 to vector<4x256xf32>
    %84 = vector.shape_cast %82 : vector<1x256xi1> to vector<1x256xi1>
    %85 = vector.broadcast %84 : vector<1x256xi1> to vector<4x256xi1>
    %86 = arith.select %85, %77, %83 : vector<4x256xi1>, vector<4x256xf32>
    %c6 = arith.constant 6 : index
    %c0_38 = arith.constant 0 : index
    %c0_39 = arith.constant 0 : index
    %87 = vector.load %arg2[%c6, %c0_38, %c0_39] : memref<9x8x4xbf16, #tpu.memory_space<vmem>>, vector<1x8x4xbf16>
    %88 = vector.shape_cast %87 : vector<1x8x4xbf16> to vector<8x4xbf16>
    %89 = arith.truncf %86 : vector<4x256xf32> to vector<4x256xbf16>
    %cst_40 = arith.constant dense<0.000000e+00> : vector<8x256xf32>
    %90 = tpu.matmul %88, %89, %cst_40 {dimension_numbers = #tpu.dot_dimension_numbers<[1], [0], [0], [1], [0, 0, 1, 1], [], []>} : vector<8x4xbf16>, vector<4x256xbf16>, vector<8x256xf32> -> vector<8x256xf32>
    %91 = arith.addf %76, %90 : vector<8x256xf32>
    %c240_i32 = arith.constant 240 : i32
    %92 = tpu.dynamic_rotate %1 by %c240_i32 dim 1 : vector<4x256xf32>, i32 -> vector<4x256xf32>
    %c15_i32_41 = arith.constant 15 : i32
    %93 = vector.broadcast %c15_i32_41 : i32 to vector<1x256xi32>
    %94 = arith.cmpi slt, %3, %93 : vector<1x256xi32>
    %cst_42 = arith.constant 0.000000e+00 : f32
    %95 = vector.broadcast %cst_42 : f32 to vector<4x256xf32>
    %96 = vector.shape_cast %94 : vector<1x256xi1> to vector<1x256xi1>
    %97 = vector.broadcast %96 : vector<1x256xi1> to vector<4x256xi1>
    %98 = arith.select %97, %92, %95 : vector<4x256xi1>, vector<4x256xf32>
    %c7 = arith.constant 7 : index
    %c0_43 = arith.constant 0 : index
    %c0_44 = arith.constant 0 : index
    %99 = vector.load %arg2[%c7, %c0_43, %c0_44] : memref<9x8x4xbf16, #tpu.memory_space<vmem>>, vector<1x8x4xbf16>
    %100 = vector.shape_cast %99 : vector<1x8x4xbf16> to vector<8x4xbf16>
    %101 = arith.truncf %98 : vector<4x256xf32> to vector<4x256xbf16>
    %cst_45 = arith.constant dense<0.000000e+00> : vector<8x256xf32>
    %102 = tpu.matmul %100, %101, %cst_45 {dimension_numbers = #tpu.dot_dimension_numbers<[1], [0], [0], [1], [0, 0, 1, 1], [], []>} : vector<8x4xbf16>, vector<4x256xbf16>, vector<8x256xf32> -> vector<8x256xf32>
    %103 = arith.addf %91, %102 : vector<8x256xf32>
    %c239_i32 = arith.constant 239 : i32
    %104 = tpu.dynamic_rotate %1 by %c239_i32 dim 1 : vector<4x256xf32>, i32 -> vector<4x256xf32>
    %c15_i32_46 = arith.constant 15 : i32
    %105 = vector.broadcast %c15_i32_46 : i32 to vector<1x256xi32>
    %106 = arith.cmpi slt, %3, %105 : vector<1x256xi32>
    %c15_i32_47 = arith.constant 15 : i32
    %107 = vector.broadcast %c15_i32_47 : i32 to vector<1x256xi32>
    %108 = arith.cmpi slt, %4, %107 : vector<1x256xi32>
    %109 = arith.andi %106, %108 : vector<1x256xi1>
    %cst_48 = arith.constant 0.000000e+00 : f32
    %110 = vector.broadcast %cst_48 : f32 to vector<4x256xf32>
    %111 = vector.shape_cast %109 : vector<1x256xi1> to vector<1x256xi1>
    %112 = vector.broadcast %111 : vector<1x256xi1> to vector<4x256xi1>
    %113 = arith.select %112, %104, %110 : vector<4x256xi1>, vector<4x256xf32>
    %c8 = arith.constant 8 : index
    %c0_49 = arith.constant 0 : index
    %c0_50 = arith.constant 0 : index
    %114 = vector.load %arg2[%c8, %c0_49, %c0_50] : memref<9x8x4xbf16, #tpu.memory_space<vmem>>, vector<1x8x4xbf16>
    %115 = vector.shape_cast %114 : vector<1x8x4xbf16> to vector<8x4xbf16>
    %116 = arith.truncf %113 : vector<4x256xf32> to vector<4x256xbf16>
    %cst_51 = arith.constant dense<0.000000e+00> : vector<8x256xf32>
    %117 = tpu.matmul %115, %116, %cst_51 {dimension_numbers = #tpu.dot_dimension_numbers<[1], [0], [0], [1], [0, 0, 1, 1], [], []>} : vector<8x4xbf16>, vector<4x256xbf16>, vector<8x256xf32> -> vector<8x256xf32>
    %118 = arith.addf %103, %117 : vector<8x256xf32>
    %c0_52 = arith.constant 0 : index
    %c0_53 = arith.constant 0 : index
    %119 = vector.load %arg4[%c0_52, %c0_53] : memref<8x1xf32, #tpu.memory_space<vmem>>, vector<8x1xf32>
    %120 = vector.broadcast %119 : vector<8x1xf32> to vector<8x256xf32>
    %121 = arith.addf %118, %120 : vector<8x256xf32>
    %c0_54 = arith.constant 0 : index
    %c0_55 = arith.constant 0 : index
    %c0_56 = arith.constant 0 : index
    %122 = vector.load %arg5[%c0_54, %c0_55, %c0_56] : memref<1x8x256xf32, #tpu.memory_space<vmem>>, vector<1x8x256xf32>
    %123 = vector.shape_cast %122 : vector<1x8x256xf32> to vector<8x256xf32>
    %124 = vector.shape_cast %121 : vector<8x256xf32> to vector<1x8x256xf32>
    tpu.vector_store %arg5[%c0_54, %c0_55, %c0_56], %124 {strides = array<i32>} : memref<1x8x256xf32, #tpu.memory_space<vmem>>, vector<1x8x256xf32>,
    return
  }
  func.func @transform_0(%arg0: i32) -> (i32, i32, i32) {
    %c0_i32 = arith.constant 0 : i32
    %c0_i32_0 = arith.constant 0 : i32
    %c0_i32_1 = arith.constant 0 : i32
    return %arg0, %c0_i32, %c0_i32_0 : i32, i32, i32
  }
  func.func @transform_1(%arg0: i32) -> (i32, i32, i32) {
    %c0_i32 = arith.constant 0 : i32
    %c0_i32_0 = arith.constant 0 : i32
    %c0_i32_1 = arith.constant 0 : i32
    %c0_i32_2 = arith.constant 0 : i32
    return %c0_i32, %c0_i32_0, %c0_i32_1 : i32, i32, i32
  }
  func.func @transform_2(%arg0: i32) -> (i32, i32) {
    %c0_i32 = arith.constant 0 : i32
    %c0_i32_0 = arith.constant 0 : i32
    %c0_i32_1 = arith.constant 0 : i32
    return %c0_i32, %c0_i32_0 : i32, i32
  }
  func.func @transform_3(%arg0: i32) -> (i32, i32) {
    %c0_i32 = arith.constant 0 : i32
    %c0_i32_0 = arith.constant 0 : i32
    %c0_i32_1 = arith.constant 0 : i32
    return %c0_i32, %c0_i32_0 : i32, i32
  }
  func.func @transform_4(%arg0: i32) -> (i32, i32, i32) {
    %c0_i32 = arith.constant 0 : i32
    %c0_i32_0 = arith.constant 0 : i32
    %c0_i32_1 = arith.constant 0 : i32
    return %arg0, %c0_i32, %c0_i32_0 : i32, i32, i32
  }
}

</mosaic_0001>

<bundles_post_ra>
// kernel: squeeze.5
= control target key start
LH: loop header
LB: loop body
LE: loop exit
PB: predicated region body
PF: predicated region fallthrough
CT: control target
= control target key end

     0   :  { %vm20_vm0 = vcmask 48128   ;;  %s130_s8 = smov 110   ;;  %s131_s9 = smov 116   ;;  %v132_v8 = vmov 0.0   ;;  %s178_s0 = inlined_call_operand.vmem [shape: bf16[8,24], index: 0, kind: input, shape index: {}]   ;;  %s179_s1 = inlined_call_operand.vmem [shape: bf16[8,4,6], index: 1, kind: output, shape index: {}]  }
   0x1   :  { %v15_v0 = vld [vmem:[%s178_s0] sm:$0xf]  ;;  %s129_s0 = smov 122  }
   0x2   :  { %v16_v1 = vunpack.c.l.bf16 %v15_v0 }
   0x4   :  { %24 = vrot.lane.b32.xlu0 %v16_v1, %s129_s0  ;;  %40 = vrot.lane.b32.xlu1 %v16_v1, %s130_s8  ;;  %21 = vst.msk [vmem:[#allocation0] ss:$8 sm:$0xf] %vm20_vm0, %v16_v1   ;;  %22 = vst.msk [vmem:[#allocation0] ss:$8 sm:$0xf0] %vm20_vm0, %v16_v1  }
   0x8   :  { %32 = vrot.lane.b32.xlu0 %v16_v1, %s131_s9 }
  0x76   :  { %v25_v2 = vpop.permute.xlu0 %24   ;;  %v41_v3 = vpop.permute.xlu1 %40  }
  0x77   :  { %28 = vst.msk [vmem:[#allocation0 + $0x1] ss:$8 sm:$0xf] %vm20_vm0, %v25_v2   ;;  %30 = vst.msk [vmem:[#allocation0 + $0x1] ss:$8 sm:$0xf0] %vm20_vm0, %v25_v2  }
  0x78   :  { %44 = vst.msk [vmem:[#allocation0 + $0x3] ss:$8 sm:$0xf] %vm20_vm0, %v41_v3   ;;  %46 = vst.msk [vmem:[#allocation0 + $0x3] ss:$8 sm:$0xf0] %vm20_vm0, %v41_v3  }
  0x7a   :  { %v33_v4 = vpop.permute.xlu0 %32  }
  0x7b   :  { %36 = vst.msk [vmem:[#allocation0 + $0x2] ss:$8 sm:$0xf] %vm20_vm0, %v33_v4   ;;  %38 = vst.msk [vmem:[#allocation0 + $0x2] ss:$8 sm:$0xf0] %vm20_vm0, %v33_v4  }
  0x82   :  { %v52_v5 = vld [vmem:[#allocation0] sm:$0xf]  ;;  %v58_v6 = vld [vmem:[#allocation0 + $0x8] sm:$0xf]  ;;  %v65_v7 = vld [vmem:[#allocation0 + $0x10] sm:$0xf] }
  0x83   :  { %v53_v9 = vpack.c.bf16 %v132_v8, %v52_v5  ;;  %v59_v10 = vpack.c.bf16 %v132_v8, %v58_v6  ;;  %v66_v11 = vpack.c.bf16 %v132_v8, %v65_v7  ;;  %v73_v12 = vld [vmem:[#allocation0 + $0x18] sm:$0xf]  ;;  %v81_v13 = vld [vmem:[#allocation0 + $0x20] sm:$0xf]  ;;  %v89_v14 = vld [vmem:[#allocation0 + $0x28] sm:$0xf] }
  0x84   :  { %v74_v15 = vpack.c.bf16 %v132_v8, %v73_v12  ;;  %v82_v16 = vpack.c.bf16 %v132_v8, %v81_v13  ;;  %v90_v17 = vpack.c.bf16 %v132_v8, %v89_v14  ;;  %v97_v18 = vld [vmem:[#allocation0 + $0x30] sm:$0xf]  ;;  %v105_v19 = vld [vmem:[#allocation0 + $0x38] sm:$0xf] }
  0x85   :  { %56 = vst [vmem:[%s179_s1] sm:$0x3] %v53_v9  ;;  %118 = vst [vmem:[%s179_s1 + $0x2] sm:$0x3] %v59_v10  ;;  %v98_v20 = vpack.c.bf16 %v132_v8, %v97_v18  ;;  %v106_v21 = vpack.c.bf16 %v132_v8, %v105_v19 }
  0x86   :  { %119 = vst [vmem:[%s179_s1 + $0x4] sm:$0x3] %v66_v11  ;;  %120 = vst [vmem:[%s179_s1 + $0x6] sm:$0x3] %v74_v15 }
  0x87   :  { %121 = vst [vmem:[%s179_s1 + $0x8] sm:$0x3] %v82_v16  ;;  %122 = vst [vmem:[%s179_s1 + $0xa] sm:$0x3] %v90_v17 }
  0x88   :  { %123 = vst [vmem:[%s179_s1 + $0xc] sm:$0x3] %v98_v20  ;;  %124 = vst [vmem:[%s179_s1 + $0xe] sm:$0x3] %v106_v21 }

// kernel: squeeze.3
= control target key start
LH: loop header
LB: loop body
LE: loop exit
PB: predicated region body
PF: predicated region fallthrough
CT: control target
= control target key end

     0   :  { %vm66_vm0 = vcmask 1047558   ;;  %vm51_vm1 = vcmask 48128   ;;  %s231_s10 = smov 110   ;;  %s232_s11 = smov 116   ;;  %v233_v32 = vmov 0.0   ;;  %s289_s0 = inlined_call_operand.vmem [shape: bf16[24,3,3], index: 0, kind: input, shape index: {}]   ;;  %s290_s1 = inlined_call_operand.vmem [shape: bf16[4,6,9], index: 1, kind: output, shape index: {}]  }
   0x1   :  { %v201_v0 = vld [vmem:[%s289_s0 + $0x2] sm:$0xf]   ;;  %v46_v1 = vld [vmem:[%s289_s0] sm:$0x3]  ;;  %s230_s0 = smov 122  }
   0x2   :  { %v18_v2 = vunpack.c.l.bf16 %v201_v0  ;;  %v47_v3 = vunpack.c.l.bf16 %v46_v1 }
   0x4   :  { %21 = vst [vmem:[#allocation1 + $0x8] ss:$8 sps:$4 sm:$0xff] %v18_v2   ;;  %49 = vst [vmem:[#allocation1] sm:$0xf] %v47_v3 }
   0xb   :  { %v63_v4 = vld.sshfl [vmem:[#allocation1] sm:$0xff pattern:$0xaaa98210]   ;;  %v65_v5 = vld [vmem:[#allocation1 + $0xa] sm:$0xc0]  }
   0xc   :  { %v67_v6 = vsel %vm66_vm0, %v65_v5, %v63_v4  ;;  %v76_v7 = vld [vmem:[#allocation1 + $0x12] sm:$0x1]   ;;  %v103_v8 = vld [vmem:[#allocation1 + $0xa] sm:$0xc0]   ;;  %v50_v14 = vld [vmem:[#allocation1] sm:$0x7]  }
   0xd   :  { %v114_v9 = vld [vmem:[#allocation1 + $0x12] sm:$0x1]   ;;  %v215_v10 = vpack.i.bf16 %v76_v7, %v67_v6  ;;  %v105_v11 = vsel %vm66_vm0, %v103_v8, %v63_v4  ;;  %v84_v12 = vld [vmem:[#allocation1 + $0xa] sm:$0xc0]   ;;  %v54_v17 = vld [vmem:[#allocation1 + $0x8] sm:$0x7]  }
   0xe   :  { %v95_v13 = vld [vmem:[#allocation1 + $0x12] sm:$0x1]   ;;  %v225_v15 = vpack.i.bf16 %v114_v9, %v105_v11  ;;  %v86_v16 = vsel %vm66_vm0, %v84_v12, %v63_v4  ;;  %52 = vst.msk [vmem:[#allocation0] ss:$8 sm:$0x7] %vm51_vm1, %v50_v14  }
   0xf   :  { %v59_v18 = vld [vmem:[#allocation1 + $0x10] sm:$0x7]   ;;  %216 = vrot.lane.b32.xlu0 %v215_v10, %s230_s0  ;;  %v220_v19 = vpack.i.bf16 %v95_v13, %v86_v16  ;;  %57 = vst.msk [vmem:[#allocation0 + $0x18] ss:$8 sm:$0x7] %vm51_vm1, %v54_v17  }
  0x10   :  { %62 = vst.msk [vmem:[#allocation0 + $0x30] ss:$8 sm:$0x7] %vm51_vm1, %v59_v18   ;;  %226 = vrot.lane.b32.xlu1 %v225_v15, %s231_s10 }
  0x13   :  { %221 = vrot.lane.b32.xlu0 %v220_v19, %s232_s11 }
  0x81   :  { %v217_v20 = vpop.permute.xlu0 %216 }
  0x82   :  { %v219_v21 = vunpack.i.h.bf16 %v217_v20  ;;  %v218_v22 = vunpack.i.l.bf16 %v217_v20  ;;  %v227_v23 = vpop.permute.xlu1 %226 }
  0x83   :  { %v229_v24 = vunpack.i.h.bf16 %v227_v23  ;;  %v228_v25 = vunpack.i.l.bf16 %v227_v23 }
  0x84   :  { %81 = vst.msk [vmem:[#allocation0 + $0x41] sm:$0x1] %vm51_vm1, %v219_v21   ;;  %72 = vst.msk [vmem:[#allocation0 + $0x1] ss:$8 sm:$0xf] %vm51_vm1, %v218_v22  }
  0x85   :  { %74 = vst.msk [vmem:[#allocation0 + $0x1] ss:$8 sm:$0xf0] %vm51_vm1, %v218_v22   ;;  %119 = vst.msk [vmem:[#allocation0 + $0x43] sm:$0x1] %vm51_vm1, %v229_v24   ;;  %v222_v26 = vpop.permute.xlu0 %221 }
  0x86   :  { %110 = vst.msk [vmem:[#allocation0 + $0x3] ss:$8 sm:$0xf] %vm51_vm1, %v228_v25   ;;  %112 = vst.msk [vmem:[#allocation0 + $0x3] ss:$8 sm:$0xf0] %vm51_vm1, %v228_v25   ;;  %v224_v27 = vunpack.i.h.bf16 %v222_v26  ;;  %v223_v28 = vunpack.i.l.bf16 %v222_v26 }
  0x88   :  { %100 = vst.msk [vmem:[#allocation0 + $0x42] sm:$0x1] %vm51_vm1, %v224_v27   ;;  %91 = vst.msk [vmem:[#allocation0 + $0x2] ss:$8 sm:$0xf] %vm51_vm1, %v223_v28  }
  0x89   :  { %93 = vst.msk [vmem:[#allocation0 + $0x2] ss:$8 sm:$0xf0] %vm51_vm1, %v223_v28  }
  0x8f   :  { %v125_v37 = vld [vmem:[#allocation0] sm:$0xf]  ;;  %v131_v38 = vld [vmem:[#allocation0 + $0x8] sm:$0xf]  ;;  %v138_v42 = vld [vmem:[#allocation0 + $0x10] sm:$0xf] }
  0x90   :  { %v154_v29 = vld [vmem:[#allocation0 + $0x20] sm:$0xf]  ;;  %v162_v30 = vld [vmem:[#allocation0 + $0x28] sm:$0xf]  ;;  %v170_v31 = vld [vmem:[#allocation0 + $0x30] sm:$0xf]  ;;  %v126_v40 = vpack.c.bf16 %v233_v32, %v125_v37  ;;  %v132_v41 = vpack.c.bf16 %v233_v32, %v131_v38  ;;  %v139_v45 = vpack.c.bf16 %v233_v32, %v138_v42 }
  0x91   :  { %v155_v33 = vpack.c.bf16 %v233_v32, %v154_v29  ;;  %v163_v34 = vpack.c.bf16 %v233_v32, %v162_v30  ;;  %v171_v35 = vpack.c.bf16 %v233_v32, %v170_v31  ;;  %v178_v36 = vld [vmem:[#allocation0 + $0x38] sm:$0xf]  ;;  %v186_v44 = vld [vmem:[#allocation0 + $0x40] sm:$0xf] }
  0x92   :  { %v179_v39 = vpack.c.bf16 %v233_v32, %v178_v36  ;;  %v146_v43 = vld [vmem:[#allocation0 + $0x18] sm:$0xf]  ;;  %v187_v47 = vpack.c.bf16 %v233_v32, %v186_v44  ;;  %129 = vst [vmem:[%s290_s1] sm:$0x3] %v126_v40  ;;  %203 = vst [vmem:[%s290_s1 + $0x2] sm:$0x3] %v132_v41 }
  0x93   :  { %206 = vst [vmem:[%s290_s1 + $0x8] sm:$0x3] %v155_v33  ;;  %207 = vst [vmem:[%s290_s1 + $0xa] sm:$0x3] %v163_v34  ;;  %v147_v46 = vpack.c.bf16 %v233_v32, %v146_v43 }
  0x94   :  { %208 = vst [vmem:[%s290_s1 + $0xc] sm:$0x3] %v171_v35  ;;  %209 = vst [vmem:[%s290_s1 + $0xe] sm:$0x3] %v179_v39 }
  0x95   :  { %204 = vst [vmem:[%s290_s1 + $0x4] sm:$0x3] %v139_v45  ;;  %205 = vst [vmem:[%s290_s1 + $0x6] sm:$0x3] %v147_v46 }
  0x96   :  { %210 = vst [vmem:[%s290_s1 + $0x10] sm:$0x3] %v187_v47 }

// kernel: depthwise_separable_conv2d.1
= control target key start
LH: loop header
LB: loop body
LE: loop exit
PB: predicated region body
PF: predicated region fallthrough
CT: control target
= control target key end

     0   :  { %s1148_s15 = smov 0   ;;  %s1409_s0 = inlined_call_operand.vmem [shape: f32[2,4,256], index: 0, kind: input, shape index: {}]   ;;  %s1410_s1 = inlined_call_operand.vmem [shape: bf16[9,8,4], index: 1, kind: input, shape index: {}]   ;;  %s1411_s2 = inlined_call_operand.vmem [shape: s32[2,256], index: 2, kind: input, shape index: {}]   ;;  %s1412_s3 = inlined_call_operand.vmem [shape: f32[8,1], index: 3, kind: input, shape index: {}]   ;;  %s1413_s4 = inlined_call_operand.vmem [shape: f32[2,8,256], index: 4, kind: output, shape index: {}]  }
   0x1 LB: > { %s1006_s16 = sadd.s32 4294967295, %s1112_s15   ;;  %p1010_p0 = scmp.ge.s32.totalorder %s1112_s15, 1  ;;  %s1112_s15 = sphi %s1148_s15, %s14_s15  }
   0x2   : > { %p162_p1 = scmp.lt.s32.totalorder %s1112_s15, 3 }
   0x4   : > { %p163_p2 = pnand %p1010_p0, %p162_p1 }
   0x5   : > { %p188_p3 = scmp.lt.s32.totalorder (!%p163_p2), %s1006_s16, 1  ;;  %s1115_s21 = smov (!%p163_p2), 16  }
   0x6   : > { %166 = sbr.rel (%p163_p2) target bundleno = 377 (0x179), region = 36  ;;  %s1116_s22 = smov (!%p163_p2), 15  }
   0x7   : > { %s1117_s23 = smov (!%p163_p2), 17   ;;  %s1118_s24 = smov (!%p163_p2), 1  }
   0x8   : > { %s1119_s25 = smov (!%p163_p2), 127   ;;  %s1120_s26 = smov (!%p163_p2), 113  }
   0x9   : > { %s1121_s27 = smov (!%p163_p2), 112   ;;  %s1122_s28 = smov (!%p163_p2), 111  }
   0xb   : > { %v1114_v0 = vmov 0   ;;  %s1432_s16 = smov (!%p188_p3, %s1006_s16), 1  ;;  %v941_v4 = vld [vmem:[%s1412_s3] sm:$0xff]  ;;  %v208_v9 = vlaneseq  ;;  %vm278_vm9 = vcmask 1041408  }
   0xc   : > { %317 = vmatprep.mubr.bf16.mxu0 %v1114_v0  ;;  %367 = vmatprep.mubr.bf16.mxu1 %v1114_v0  ;;  %s1045_s17 = sshll.u32 %s1432_s16, 3  ;;  %v200_v5 = vld [vmem:[%s1411_s2] sm:$0xf] }
   0xd   : > { %1104 = vset.pattern.permute.xlu0 %v1114_v0  ;;  %s192_s20 = scalar_lea.vmem %s1409_s0, %s1045_s17  ;;  %vm383_vm0 = vcmp.lt.s32.totalorder %v200_v5, 15  ;;  %vm213_vm1 = vcmp.ge.s32.totalorder %v200_v5, 1  ;;  %v221_v12 = vshrl.u32 %v208_v9, 7  ;;  %v1203_v25 = vand.u32 127, %v208_v9 }
   0xe   : > { %v1165_v1 = vld [vmem:[%s192_s20] sm:$0xff]  ;;  %v1181_v6 = vsel %vm383_vm0, 1, %v1114_v0  ;;  %v214_v7 = vsel %vm213_vm1, 1, %v1114_v0 }
   0xf   : > { %v1169_v2 = vcombine.high %v1165_v1, %v1165_v1  ;;  %v1021_v8 = vrot.slane %v1181_v6, 9  ;;  %v1015_v10 = vrot.slane %v214_v7, 9  ;;  %v1191_v13 = vsub.s32 0, %v221_v12 }
  0x10   : > { %v1193_v14 = vsub.s32 2, %v221_v12  ;;  %v479_v16 = vsub.s32 3, %v221_v12  ;;  %v475_v17 = vsub.s32 1, %v221_v12  ;;  %vm380_vm7 = vcmp.lt.s32.totalorder %v1203_v25, 15 }
  0x11   : > { %v1064_v3 = vpack.i.bf16 %v1169_v2, %v1165_v1  ;;  %vm1185_vm2 = vcmp.ne.s32.totalorder %v1021_v8, 0  ;;  %vm217_vm3 = vcmp.ne.s32.totalorder %v1015_v10, 0  ;;  %v253_v21 = vrot.slane %v214_v7, %v1191_v13 }
  0x12   : > { %vm388_vm4 = vmand %vm213_vm1, %vm1185_vm2  ;;  %v257_v20 = vrot.slane %v214_v7, %v1193_v14  ;;  %v480_v22 = vrot.slane %v214_v7, %v479_v16  ;;  %v476_v28 = vrot.slane %v214_v7, %v475_v17  ;;  %v619_v34 = vrot.slane %v1181_v6, %v479_v16 }
  0x13   : > { %1065 = vrot.lane.b32.xlu0 %v1064_v3, %s1115_s21  ;;  %1075 = vrot.lane.b32.xlu1 %v1064_v3, %s1116_s22  ;;  %vm218_vm5 = vmand %vm213_vm1, %vm217_vm3  ;;  %v389_v15 = vsel %vm388_vm4, 1, %v1114_v0  ;;  %v261_v31 = vrot.slane %v253_v21, %v1191_v13  ;;  %vm247_vm8 = vcmp.lt.s32.totalorder %v1203_v25, 16  ;;  %v615_v39 = vrot.slane %v1181_v6, %v475_v17 }
  0x14   : > { %v219_v18 = vsel %vm218_vm5, 1, %v1114_v0  ;;  %v397_v19 = vrot.slane %v389_v15, %v1193_v14  ;;  %vm695_vm6 = vmand %vm383_vm0, %vm217_vm3  ;;  %v393_v23 = vrot.slane %v389_v15, %v1191_v13  ;;  %v265_v30 = vrot.slane %v257_v20, %v1191_v13 }
  0x15   : > { %v227_v24 = vrot.slane %v219_v18, %v1193_v14  ;;  %v696_v26 = vsel %vm695_vm6, 1, %v1114_v0  ;;  %v223_v27 = vrot.slane %v219_v18, %v1191_v13  ;;  %v488_v32 = vrot.slane %v480_v22, %v475_v17  ;;  %vm863_vm10 = vmand %vm383_vm0, %vm1185_vm2 }
  0x16   : > { %v405_v29 = vrot.slane %v397_v19, %v1191_v13  ;;  %v401_v33 = vrot.slane %v393_v23, %v1191_v13  ;;  %v704_v36 = vrot.slane %v696_v26, %v1193_v14  ;;  %v1221_v38 = vrot.slane %v476_v28, %v475_v17 }
  0x17   : > { %1070 = vrot.lane.b32.xlu0 %v1064_v3, %s1117_s23  ;;  %1080 = vrot.lane.b32.xlu1 %v1064_v3, %s1118_s24  ;;  %v1214_v35 = vrot.slane %v227_v24, %v1191_v13  ;;  %v1219_v37 = vrot.slane %v223_v27, %v1191_v13  ;;  %vm267_vm12 = vcmp.eq.s32.totalorder %v265_v30, 1  ;;  %vm266_vm13 = vcmp.eq.s32.totalorder %v261_v31, 1  ;;  %v1016_v24 = vld [vmem:[%s1410_s1 + $0x4] sm:$0xf] }
  0x18   : > { %vm407_vm11 = vcmp.eq.s32.totalorder %v405_v29, 1  ;;  %vm470_vm14 = vcmp.lt.s32.totalorder %v1203_v25, 1  ;;  %vm210_vm15 = vcmp.lt.s32.totalorder %v1203_v25, 17  ;;  %vm1229_vm1 = vcmp.eq.s32.totalorder %v488_v32, 1 }
  0x19   : > { %vm406_vm3 = vcmp.eq.s32.totalorder %v401_v33, 1  ;;  %v627_v41 = vrot.slane %v619_v34, %v475_v17  ;;  %v787_v42 = vrot.slane %v1181_v6, %v1193_v14  ;;  %v700_v43 = vrot.slane %v696_v26, %v1191_v13 }
  0x1a   : > { %vm237_vm0 = vcmp.eq.s32.totalorder %v1214_v35, 1  ;;  %v552_v44 = vpack.c.bf16 %v1169_v2, %v1169_v2  ;;  %v1240_v45 = vrot.slane %v704_v36, %v1191_v13  ;;  %v1243_v46 = vsel %vm863_vm10, 1, %v1114_v0  ;;  %v1022_v2 = vld [vmem:[%s1410_s1 + $0x8] sm:$0xf] }
  0x1b   : > { %1085 = vrot.lane.b32.xlu0 %v1064_v3, %s1119_s25  ;;  %1090 = vrot.lane.b32.xlu1 %v1064_v3, %s1120_s26  ;;  %vm236_vm4 = vcmp.eq.s32.totalorder %v1219_v37, 1  ;;  %vm489_vm5 = vcmp.eq.s32.totalorder %v1221_v38, 1  ;;  %v551_v49 = vpack.c.bf16 %v1165_v1, %v1165_v1  ;;  %v1249_v50 = vrot.slane %v615_v39, %v475_v17 }
  0x1c   : > { %vm609_vm6 = vcmp.lt.s32.totalorder %v1203_v25, 127  ;;  %vm1252_vm10 = vcmp.eq.s32.totalorder %v627_v41, 1  ;;  %v1258_v56 = vrot.slane %v787_v42, %v1191_v13  ;;  %v872_v57 = vrot.slane %v1243_v46, %v1193_v14 }
  0x1d   : > { %v1263_v58 = vrot.slane %v700_v43, %v1191_v13  ;;  %v783_v59 = vrot.slane %v1181_v6, %v1191_v13  ;;  %vm714_vm2 = vcmp.eq.s32.totalorder %v1240_v45, 1  ;;  %v240_v43 = vld [vmem:[%s1410_s1] sm:$0xf]  ;;  %v557_v45 = vsel %vm278_vm9, %v551_v49, 0 }
  0x1f   : > { %1095 = vrot.lane.b32.xlu0 %v1064_v3, %s1121_s27  ;;  %1100 = vrot.lane.b32.xlu1 %v1064_v3, %s1122_s28  ;;  %v1290_v21 = vrot.slane %v783_v59, %v1191_v13  ;;  %s1046_s27 = sshll.u32 %s1432_s16, 4 }
  0x20   : > { %s197_s30 = scalar_lea.vmem %s1413_s4, %s1046_s27 }
  0x23   : > { %944 = vperm.xlu0 %1104, %v941_v4  }
  0x85   : > { %v1066_v47 = vpop.permute.xlu0 %1065  ;;  %v1076_v48 = vpop.permute.xlu1 %1075 }
  0x86   : > { %v1068_v51 = vunpack.i.h.bf16 %v1066_v47  ;;  %v1067_v52 = vunpack.i.l.bf16 %v1066_v47  ;;  %v1078_v53 = vunpack.i.h.bf16 %v1076_v48  ;;  %v1077_v54 = vunpack.i.l.bf16 %v1076_v48 }
  0x88   : > { %v381_v60 = vsel %vm380_vm7, %v1077_v54, %v1078_v53  ;;  %v382_v61 = vsel %vm380_vm7, %v1078_v53, %v1077_v54  ;;  %v248_v62 = vsel %vm247_vm8, %v1067_v52, %v1068_v51  ;;  %v249_v63 = vsel %vm247_vm8, %v1068_v51, %v1067_v52 }
  0x89   : > { %v409_v3 = vsel %vm407_vm11, %v381_v60, 0.0  ;;  %v1071_v4 = vpop.permute.xlu0 %1070  ;;  %v269_v5 = vsel %vm267_vm12, %v248_v62, 0.0  ;;  %v268_v6 = vsel %vm266_vm13, %v249_v63, 0.0  ;;  %v1081_v7 = vpop.permute.xlu1 %1080  ;;  %v408_v8 = vsel %vm406_vm3, %v382_v61, 0.0 }
  0x8a   : > { %vm628_vm7 = vcmp.eq.s32.totalorder %v1249_v50, 1  ;;  %v1073_v9 = vunpack.i.h.bf16 %v1071_v4  ;;  %v1072_v10 = vunpack.i.l.bf16 %v1071_v4  ;;  %v273_v11 = vpack.c.bf16 %v269_v5, %v269_v5 }
  0x8b   : > { %v272_v12 = vpack.c.bf16 %v268_v6, %v268_v6  ;;  %vm777_vm8 = vcmp.lt.s32.totalorder %v1203_v25, 112  ;;  %v1083_v14 = vunpack.i.h.bf16 %v1081_v7  ;;  %v1082_v15 = vunpack.i.l.bf16 %v1081_v7 }
  0x8c   : > { %v413_v16 = vpack.c.bf16 %v409_v3, %v409_v3  ;;  %v412_v17 = vpack.c.bf16 %v408_v8, %v408_v8  ;;  %1017 = vmatprep.subr.msk.bf16.mxu0 %vm278_vm9, %v273_v11  ;;  %v211_v19 = vsel %vm210_vm15, %v1072_v10, %v1073_v9  ;;  %v212_v20 = vsel %vm210_vm15, %v1073_v9, %v1072_v10 }
  0x8d   : > { %v280_v18 = vsel %vm278_vm9, %v272_v12, 0  ;;  %vm797_vm11 = vcmp.eq.s32.totalorder %v1258_v56, 1  ;;  %v471_v22 = vsel %vm470_vm14, %v1082_v15, %v1083_v14  ;;  %v472_v23 = vsel %vm470_vm14, %v1083_v14, %v1082_v15  ;;  %v1086_v28 = vpop.permute.xlu0 %1085  ;;  %v1091_v29 = vpop.permute.xlu1 %1090  ;;  %v1025_v56 = vld [vmem:[%s1410_s1 + $0xc] sm:$0xf]  ;;  %v1028_v14 = vld [vmem:[%s1410_s1 + $0x10] sm:$0xf] }
  0x8e   : > { %300 = vmatpush1.bf16.msra.mxu0 %v280_v18  ;;  %v239_v26 = vsel %vm237_vm0, %v211_v19, 0.0  ;;  %v238_v27 = vsel %vm236_vm4, %v212_v20, 0.0  ;;  %v492_v30 = vsel %vm1229_vm1, %v471_v22, 0.0  ;;  %v418_v33 = vsel %vm278_vm9, %v412_v17, 0 }
  0x8f   : > { %v242_v31 = vpack.c.bf16 %v239_v26, %v239_v26  ;;  %1023 = vmatprep.subr.msk.bf16.mxu0 %vm278_vm9, %v413_v16  ;;  %v241_v32 = vpack.c.bf16 %v238_v27, %v238_v27  ;;  %v496_v34 = vpack.c.bf16 %v492_v30, %v492_v30  ;;  %v1088_v36 = vunpack.i.h.bf16 %v1086_v28 }
  0x90   : > { %v1087_v39 = vunpack.i.l.bf16 %v1086_v28  ;;  %v491_v35 = vsel %vm489_vm5, %v472_v23, 0.0  ;;  %vm1420_vm12 = vcmask 31744   ;;  %v1093_v41 = vunpack.i.h.bf16 %v1091_v29  ;;  %v1037_v23 = vld [vmem:[%s1410_s1 + $0x1c] sm:$0xf] }
  0x91   : > { %1018 = vmatmul.mubr.msk.bf16.vlgmr.msra.gmra.mxu0 %vm1420_vm12, %v1016_v24  ;;  %1019 = vmatprep.subr.msk.bf16.mxu1 %vm278_vm9, %v242_v31  ;;  %v330_v37 = vsel %vm278_vm9, %v241_v32, 0  ;;  %v495_v40 = vpack.c.bf16 %v491_v35, %v491_v35  ;;  %v1092_v42 = vunpack.i.l.bf16 %v1091_v29  ;;  %v1096_v48 = vpop.permute.xlu0 %1095  ;;  %v880_v51 = vrot.slane %v872_v57, %v1191_v13  ;;  %v1101_v52 = vpop.permute.xlu1 %1100  ;;  %vm1422_vm15 = vmmov %vm1420_vm12  ;;  %v1040_v24 = vld [vmem:[%s1410_s1 + $0x20] sm:$0xf] }
  0x92   : > { %350 = vmatpush1.bf16.msra.mxu1 %v330_v37  ;;  %438 = vmatpush1.bf16.msra.mxu0 %v418_v33  ;;  %v610_v47 = vsel %vm609_vm6, %v1087_v39, %v1088_v36  ;;  %v611_v38 = vsel %vm609_vm6, %v1088_v36, %v1087_v39  ;;  %vm713_vm13 = vcmp.eq.s32.totalorder %v1263_v58, 1  ;;  %vm1421_vm14 = vcmp.lt.s32.totalorder %v1203_v25, 113 }
  0x93   : > { %1026 = vmatprep.subr.msk.bf16.mxu1 %vm278_vm9, %v496_v34  ;;  %v631_v53 = vsel %vm1252_vm10, %v611_v38, 0.0  ;;  %455 = vmatprep.mubr.bf16.mxu0 %v1114_v0  ;;  %v501_v54 = vsel %vm278_vm9, %v495_v40, 0  ;;  %v694_v59 = vsel %vm1421_vm14, %v1093_v41, %v1092_v42  ;;  %v868_v60 = vrot.slane %v1243_v46, %v1191_v13  ;;  %vm1423_vm1 = vmmov %vm1421_vm14 }
  0x94   : > { %1029 = vmatprep.subr.msk.bf16.mxu0 %vm278_vm9, %v552_v44  ;;  %v716_v57 = vsel %vm714_vm2, %v694_v59, 0.0  ;;  %v635_v55 = vpack.c.bf16 %v631_v53, %v631_v53  ;;  %v1098_v61 = vunpack.i.h.bf16 %v1096_v48  ;;  %v1097_v62 = vunpack.i.l.bf16 %v1096_v48  ;;  %vm1424_vm2 = vmmov %vm1420_vm12 }
  0x95   : > { %1020 = vmatmul.mubr.msk.bf16.vlgmr.msra.gmra.mxu1 %vm1422_vm15, %v240_v43  ;;  %v693_v63 = vsel %vm1423_vm1, %v1092_v42, %v1093_v41  ;;  %v630_v3 = vsel %vm628_vm7, %v610_v47, 0.0  ;;  %v1103_v46 = vunpack.i.h.bf16 %v1101_v52  ;;  %v1102_v4 = vunpack.i.l.bf16 %v1101_v52  ;;  %vm1425_vm5 = vmmov %vm1424_vm2 }
  0x96   : > { %521 = vmatpush1.bf16.msra.mxu1 %v501_v54  ;;  %538 = vmatprep.mubr.bf16.mxu1 %v1114_v0  ;;  %v779_v44 = vsel %vm777_vm8, %v1098_v61, %v1097_v62  ;;  %vm860_vm3 = vcmp.lt.s32.totalorder %v1203_v25, 111  ;;  %v634_v50 = vpack.c.bf16 %v630_v3, %v630_v3  ;;  %v720_v5 = vpack.c.bf16 %v716_v57, %v716_v57  ;;  %vm1426_vm10 = vmmov %vm1424_vm2  ;;  %v1031_v25 = vld [vmem:[%s1410_s1 + $0x14] sm:$0xf] }
  0x97   : > { %1032 = vmatprep.subr.msk.bf16.mxu1 %vm278_vm9, %v635_v55  ;;  %v799_v6 = vsel %vm797_vm11, %v779_v44, 0.0  ;;  %v715_v7 = vsel %vm713_vm13, %v693_v63, 0.0  ;;  %vm796_vm0 = vcmp.eq.s32.totalorder %v1290_v21, 1  ;;  %v778_v8 = vsel %vm777_vm8, %v1097_v62, %v1098_v61  ;;  %vm1427_vm7 = vmmov %vm1424_vm2  ;;  %v1034_v21 = vld [vmem:[%s1410_s1 + $0x18] sm:$0xf] }
  0x98   : > { %vm882_vm4 = vcmp.eq.s32.totalorder %v880_v51, 1  ;;  %v862_v1 = vsel %vm860_vm3, %v1103_v46, %v1102_v4  ;;  %v876_v49 = vrot.slane %v868_v60, %v1191_v13  ;;  %v640_v58 = vsel %vm278_vm9, %v634_v50, 0  ;;  %vm1428_vm8 = vmmov %vm1424_vm2 }
  0x99   : > { %1024 = vmatmul.mubr.msk.bf16.vlgmr.msra.gmra.mxu0 %vm1424_vm2, %v1022_v2  ;;  %v719_v9 = vpack.c.bf16 %v715_v7, %v715_v7  ;;  %v803_v10 = vpack.c.bf16 %v799_v6, %v799_v6  ;;  %v884_v11 = vsel %vm882_vm4, %v862_v1, 0.0  ;;  %v798_v12 = vsel %vm796_vm0, %v778_v8, 0.0  ;;  %vm1429_vm11 = vmmov %vm1424_vm2 }
  0x9a   : > { %577 = vmatpush1.bf16.msra.mxu0 %v557_v45  ;;  %594 = vmatprep.mubr.bf16.mxu0 %v1114_v0  ;;  %v861_v13 = vsel %vm860_vm3, %v1102_v4, %v1103_v46  ;;  %vm881_vm6 = vcmp.eq.s32.totalorder %v876_v49, 1  ;;  %v888_v15 = vpack.c.bf16 %v884_v11, %v884_v11  ;;  %v802_v17 = vpack.c.bf16 %v798_v12, %v798_v12  ;;  %vm1430_vm12 = vmmov %vm1424_vm2 }
  0x9b   : > { %1035 = vmatprep.subr.msk.bf16.mxu0 %vm278_vm9, %v720_v5  ;;  %v725_v16 = vsel %vm278_vm9, %v719_v9, 0  ;;  %v883_v18 = vsel %vm881_vm6, %v861_v13, 0.0 }
  0x9c   : > { %v808_v19 = vsel %vm278_vm9, %v802_v17, 0  ;;  %v887_v20 = vpack.c.bf16 %v883_v18, %v883_v18 }
  0x9d   : > { %1027 = vmatmul.mubr.msk.bf16.vlgmr.msra.gmra.mxu1 %vm1425_vm5, %v1025_v56 }
  0x9e   : > { %660 = vmatpush1.bf16.msra.mxu1 %v640_v58  ;;  %677 = vmatprep.mubr.bf16.mxu1 %v1114_v0  ;;  %v893_v22 = vsel %vm278_vm9, %v887_v20, 0  ;;  %v945_v1 = vpop.permute.xlu0 %944 }
  0x9f   : > { %1038 = vmatprep.subr.msk.bf16.mxu1 %vm278_vm9, %v803_v10 }
  0xa1   : > { %1030 = vmatmul.mubr.msk.bf16.vlgmr.msra.gmra.mxu0 %vm1426_vm10, %v1028_v14 }
  0xa2   : > { %745 = vmatpush1.bf16.msra.mxu0 %v725_v16  ;;  %762 = vmatprep.mubr.bf16.mxu0 %v1114_v0 }
  0xa3   : > { %1041 = vmatprep.subr.msk.bf16.mxu0 %vm278_vm9, %v888_v15 }
  0xa5   : > { %1033 = vmatmul.mubr.msk.bf16.vlgmr.msra.gmra.mxu1 %vm1427_vm7, %v1031_v25 }
  0xa6   : > { %828 = vmatpush1.bf16.msra.mxu1 %v808_v19  ;;  %845 = vmatprep.mubr.bf16.mxu1 %v1114_v0 }
  0xa9   : > { %1036 = vmatmul.mubr.msk.bf16.vlgmr.msra.gmra.mxu0 %vm1428_vm8, %v1034_v21 }
  0xaa   : > { %913 = vmatpush1.bf16.msra.mxu0 %v893_v22  ;;  %930 = vmatprep.mubr.bf16.mxu0 %v1114_v0 }
  0xad   : > { %1039 = vmatmul.mubr.msk.bf16.vlgmr.msra.gmra.mxu1 %vm1429_vm11, %v1037_v23 }
  0xb1   : > { %1042 = vmatmul.mubr.msk.bf16.vlgmr.msra.gmra.mxu0 %vm1430_vm12, %v1040_v24 }
 0x151   : > { %v319_v26 = vpop.f32.mrf.mxu0 }
 0x153   : > { %v321_v27 = vpop.f32.mrf.mxu0 }
 0x155   : > { %v323_v28 = vpop.f32.mrf.mxu0  ;;  %v369_v29 = vpop.f32.mrf.mxu1 }
 0x156   : > { %v370_v47 = vadd.f32 %v369_v29, %v319_v26 }
 0x157   : > { %v324_v30 = vpop.f32.mrf.mxu0  ;;  %v371_v31 = vpop.f32.mrf.mxu1 }
 0x158   : > { %v372_v51 = vadd.f32 %v371_v31, %v321_v27 }
 0x159   : > { %v373_v32 = vpop.f32.mrf.mxu1  ;;  %v457_v33 = vpop.f32.mrf.mxu0 }
 0x15a   : > { %v464_v52 = vadd.f32 %v457_v33, %v370_v47 }
 0x15b   : > { %v374_v34 = vpop.f32.mrf.mxu1  ;;  %v459_v36 = vpop.f32.mrf.mxu0 }
 0x15c   : > { %v465_v59 = vadd.f32 %v459_v36, %v372_v51 }
 0x15d   : > { %v461_v39 = vpop.f32.mrf.mxu0  ;;  %v540_v0 = vpop.f32.mrf.mxu1 }
 0x15e   : > { %v547_v60 = vadd.f32 %v540_v0, %v464_v52 }
 0x15f   : > { %v462_v35 = vpop.f32.mrf.mxu0  ;;  %v542_v37 = vpop.f32.mrf.mxu1 }
 0x160   : > { %v548_v61 = vadd.f32 %v542_v37, %v465_v59 }
 0x161   : > { %v544_v40 = vpop.f32.mrf.mxu1  ;;  %v596_v41 = vpop.f32.mrf.mxu0 }
 0x162   : > { %v603_v62 = vadd.f32 %v596_v41, %v547_v60 }
 0x163   : > { %v545_v42 = vpop.f32.mrf.mxu1  ;;  %v598_v43 = vpop.f32.mrf.mxu0 }
 0x164   : > { %v604_v46 = vadd.f32 %v598_v43, %v548_v61 }
 0x165   : > { %v600_v38 = vpop.f32.mrf.mxu0  ;;  %v679_v48 = vpop.f32.mrf.mxu1 }
 0x166   : > { %v686_v4 = vadd.f32 %v679_v48, %v603_v62 }
 0x167   : > { %v601_v53 = vpop.f32.mrf.mxu0  ;;  %v681_v54 = vpop.f32.mrf.mxu1 }
 0x168   : > { %v687_v45 = vadd.f32 %v681_v54, %v604_v46 }
 0x169   : > { %v683_v57 = vpop.f32.mrf.mxu1  ;;  %v764_v55 = vpop.f32.mrf.mxu0 }
 0x16a   : > { %v771_v50 = vadd.f32 %v764_v55, %v686_v4 }
 0x16b   : > { %v684_v63 = vpop.f32.mrf.mxu1  ;;  %v766_v3 = vpop.f32.mrf.mxu0 }
 0x16c   : > { %v772_v7 = vadd.f32 %v766_v3, %v687_v45 }
 0x16d   : > { %v768_v2 = vpop.f32.mrf.mxu0  ;;  %v847_v44 = vpop.f32.mrf.mxu1 }
 0x16e   : > { %v854_v8 = vadd.f32 %v847_v44, %v771_v50 }
 0x16f   : > { %v769_v5 = vpop.f32.mrf.mxu0  ;;  %v849_v6 = vpop.f32.mrf.mxu1 }
 0x170   : > { %v855_v58 = vadd.f32 %v849_v6, %v772_v7 }
 0x171   : > { %v851_v49 = vpop.f32.mrf.mxu1  ;;  %v932_v56 = vpop.f32.mrf.mxu0 }
 0x172   : > { %v939_v9 = vadd.f32 %v932_v56, %v854_v8 }
 0x173   : > { %v852_v10 = vpop.f32.mrf.mxu1  ;;  %v934_v11 = vpop.f32.mrf.mxu0 }
 0x174   : > { %v947_v12 = vadd.f32 %v945_v1, %v939_v9  ;;  %v940_v13 = vadd.f32 %v934_v11, %v855_v58 }
 0x175   : > { %v936_v14 = vpop.f32.mrf.mxu0 }
 0x176   : > { %949 = vst [vmem:[%s197_s30] sm:$0xff] %v947_v12  ;;  %v948_v15 = vadd.f32 %v945_v1, %v940_v13 }
 0x177   : > { %v937_v16 = vpop.f32.mrf.mxu0 }
 0x178   : > { %950 = vst [vmem:[%s197_s30 + $0x8] sm:$0xff] %v948_v15 }
 0x179 PF: > { %s14_s15 = sadd.s32 1, %s1112_s15  }
 0x17a   : > { %p11_p4 = scmp.ge.s32.totalorder %s14_s15, 4  }
 0x17c   :  { %13 = sbr.rel (!%p11_p4) target bundleno = 1 (0x1), region = 74 }

</bundles_post_ra>
